<compile_context>
chip_gen: v7x
topology: tpu7x:2x2x1
jax: 0.10.0
libtpu: 0.0.40
codegen_flags: <defaults>
</compile_context>

<pallas_src>
import warnings

import jax
import jax.numpy as jnp
from jax.experimental import pallas as pl
from jax.experimental.pallas import tpu as pltpu

_LANE = 128
_SUBLANE = 8
# Per-grid-step tile-data budget.  Input tile + aliased output tile, each
# double-buffered => ~4 live copies of one tile in VMEM.  16 MiB of tile data
# keeps total scoped-VMEM use well under the explicit 32 MiB limit below,
# which is safe on v5e/v6e (128 MiB physical) and v7x (64 MiB physical).
_TILE_BUDGET_BYTES = 16 * 1024 * 1024
_VMEM_LIMIT_BYTES = 32 * 1024 * 1024
_MIN_GRID_STEPS = 4   # >= 2 feature tiles per TensorCore on v7x's 2-TC chips


def _round_up(x, m):
    return ((x + m - 1) // m) * m


# ----------------------------------------------------------------------------
# Pallas kernel: masked zeroing of one (tb, tf) tile of the flattened batch.
#   out[b, f] = data[b, f] * mask[b]
# ----------------------------------------------------------------------------
def _mask_batch_kernel(mask_ref, data_ref, out_ref):
    # mask_ref: (tb, 1) column, broadcast across the lane axis by the VPU.
    # data_ref / out_ref: (tb, tf) lane-dense tile.
    out_ref[...] = data_ref[...] * mask_ref[...]


def _row_pack_factor(B, F, itemsize):
    """(B, F) -> (B*k, F//k) so each vreg's sublane dimension is filled.

    One vreg holds 8 rows of f32, 16 of bf16, 32 of int8/fp8; when B is
    smaller than that, splitting each row across k packed rows gives full
    vld/vst vregs.  Row b maps to packed rows b*k .. b*k+k-1, so repeating the
    mask k times preserves semantics exactly.
    """
    target_rows = _SUBLANE * max(1, 4 // max(1, itemsize))
    k = 1
    while B * k < target_rows:
        k2 = k * 2
        if F % k2 != 0 or (F // k2) % _LANE != 0:
            break
        k = k2
    return k


def _choose_tiles(B_eff, F, itemsize, tile_features=None):
    """Pick (tb, tf): lane-dense feature tile + batch tile under VMEM budget."""
    f_aligned = _round_up(F, _LANE)
    if F <= _LANE:
        tf = F                                   # block == full (tiny) lane dim
    elif tile_features is not None:
        tf = _round_up(max(1, int(tile_features)), _LANE)
        tf = min(tf, f_aligned)
    else:
        row_bytes = max(1, B_eff * itemsize)
        # (1) VMEM budget: in + aliased out, double-buffered => 4 tile copies.
        tf_budget = max(_LANE,
                        (_TILE_BUDGET_BYTES // (4 * row_bytes)) // _LANE * _LANE)
        # (2) Keep >= _MIN_GRID_STEPS feature tiles so both v7x TCs get work.
        tf_steps = max(_LANE, _round_up(pl.cdiv(F, _MIN_GRID_STEPS), _LANE))
        tf = min(tf_budget, tf_steps, f_aligned)
    # Batch tile: shrink only when B_eff alone would blow the budget
    # (huge-B case where tf is already floored at one lane group).
    max_tb = _TILE_BUDGET_BYTES // max(1, 4 * tf * itemsize)
    if B_eff <= max(1, max_tb):
        tb = B_eff
    else:
        tb = max(_SUBLANE, (max_tb // _SUBLANE) * _SUBLANE)
    return tb, tf


def process_batch_pallas(stacked_flat, mask, tile_features=None):
    """__process_batch masking on TPU via Pallas.

    stacked_flat : (B, F) array (native dtype)  -- flattened batch items
    mask         : (B,)   array                 -- 1 where present, 0 where None
    returns      : (B, F) array, same dtype     -- None rows zeroed
    """
    B, F = stacked_flat.shape
    dtype = stacked_flat.dtype
    itemsize = jnp.dtype(dtype).itemsize

    # Sublane packing: (B, F) -> (B*k, F//k) when B underfills a vreg.
    k = _row_pack_factor(B, F, itemsize)
    B_eff, F_eff = B * k, F // k
    data = stacked_flat.reshape(B_eff, F_eff) if k > 1 else stacked_flat
    mask_rows = jnp.repeat(mask, k) if k > 1 else mask
    mask2d = mask_rows.reshape(B_eff, 1).astype(dtype)

    tb, tf = _choose_tiles(B_eff, F_eff, itemsize, tile_features)
    grid = (pl.cdiv(B_eff, tb), pl.cdiv(F_eff, tf))

    # Scoped VMEM: actual tile footprint + headroom, explicit on all gens
    # (overrides v5e's 16 MiB default; stays under v7x's 64 MiB physical).
    tile_bytes = 4 * tb * tf * itemsize + 2 * _round_up(tb, _SUBLANE) * _LANE * itemsize
    vmem_limit = min(64 * 1024 * 1024,
                     max(_VMEM_LIMIT_BYTES, tile_bytes + (4 << 20)))

    out = pl.pallas_call(
        _mask_batch_kernel,
        out_shape=jax.ShapeDtypeStruct((B_eff, F_eff), dtype),
        grid_spec=pltpu.PrefetchScalarGridSpec(
            num_scalar_prefetch=0,
            grid=grid,
            in_specs=[
                pl.BlockSpec((tb, 1), lambda i, j: (i, 0)),    # mask column
                pl.BlockSpec((tb, tf), lambda i, j: (i, j)),   # data tile
            ],
            out_specs=pl.BlockSpec((tb, tf), lambda i, j: (i, j)),
        ),
        # Masked result overwrites the stacked input buffer (no 2nd B*F alloc).
        input_output_aliases={1: 0},
        compiler_params=pltpu.CompilerParams(
            dimension_semantics=("parallel", "parallel"),
            vmem_limit_bytes=vmem_limit,
        ),
        cost_estimate=pl.CostEstimate(
            flops=B_eff * F_eff,
            transcendentals=0,
            bytes_accessed=(2 * B_eff * F_eff + B_eff) * itemsize,
        ),
    )(mask2d, data)

    return out.reshape(B, F) if k > 1 else out


# jit wrapper: donating the stacked buffer makes input_output_aliases truly
# in-place and removes eager per-op dispatch around the kernel.
_process_batch_jit = jax.jit(process_batch_pallas,
                             static_argnames=("tile_features",),
                             donate_argnums=(0,))


# ----------------------------------------------------------------------------
# Python-side AbstractModel analogue.
# ----------------------------------------------------------------------------
class AbstractModelJAX:
    """JAX/Pallas analogue of the abstract PyTorch AbstractModel."""

    def __init__(self, min_kernel_bytes=1 << 20):
        self.compiled = False
        # Batches below this skip the Pallas pass: zeros are already
        # substituted at stack time, so the mask-multiply is a no-op and the
        # kernel would be pure HBM traffic with no numerical effect.
        self.min_kernel_bytes = min_kernel_bytes

    def compile(self, optimizer=None, **kwargs):
        # TODO(synk): optimizer wiring (optax) is framework plumbing, not a kernel.
        self.compiled = True

    def process_batch(self, data, tile_features=None):
        """data: dict key -> list of arrays-or-None (same shape/dtype per key).

        Returns (data, mask) dicts matching __process_batch semantics:
          data[key]: stacked batch with None entries replaced by zeros
          mask[key]: int32 vector, 1 where present, 0 where None
        """
        out_data, out_mask = {}, {}
        for key, items in data.items():
            mask = jnp.array([int(x is not None) for x in items],
                             dtype=jnp.int32)
            template = next(x for x in items if x is not None)
            item_shape = template.shape
            # Stack in the items' NATIVE dtype (no forced float32 cast).
            stacked = jnp.stack(
                [x if x is not None else jnp.zeros_like(template)
                 for x in items]
            )
            B = stacked.shape[0]
            flat = stacked.reshape(B, -1)                      # (B, C*H*W)
            nbytes = flat.size * jnp.dtype(flat.dtype).itemsize
            if nbytes >= self.min_kernel_bytes:
                flat = _process_batch_jit(flat, mask.astype(flat.dtype),
                                          tile_features=tile_features)
            # else: zero placeholders already match the reference; skip kernel.
            out_data[key] = flat.reshape((B,) + item_shape)
            out_mask[key] = mask
        return out_data, out_mask

    def forward(self, data, mask):
        # TODO(synk): abstract in the reference (raises NotImplementedError);
        # no concrete forward compute exists to translate.
        raise NotImplementedError()

    def loss(self, pred, target):
        # TODO(synk): abstract in the reference (raises NotImplementedError).
        raise NotImplementedError()


# ----------------------------------------------------------------------------
# Demo / smoke test
# ----------------------------------------------------------------------------
if __name__ == "__main__":
    warnings.filterwarnings("ignore", message=".*[Dd]onat.*")

    key = jax.random.PRNGKey(0)
    k1, k2, k3 = jax.random.split(key, 3)

    # min_kernel_bytes=0 forces the Pallas path even at demo sizes.
    model = AbstractModelJAX(min_kernel_bytes=0)

    # --- Case 1: f32 batch through the model path, 4-step feature grid -------
    B, C, H, W = 8, 4, 16, 16          # feature dim = 4*16*16 = 1024
    k_items = jax.random.split(k1, B)
    items = [jax.random.normal(k_items[i], (C, H, W), dtype=jnp.float32)
             for i in range(B)]
    items[2] = None
    items[5] = None
    template = next(x for x in items if x is not None)
    ref = jnp.stack([x if x is not None else jnp.zeros_like(template)
                     for x in items])

    data_out, mask_out = model.process_batch({"image": items},
                                             tile_features=256)
    img = jax.block_until_ready(data_out["image"])
    msk = jax.block_until_ready(mask_out["image"])
    assert img.shape == (B, C, H, W) and img.dtype == jnp.float32
    assert bool(jnp.array_equal(img, ref))
    assert bool(jnp.all(img[2] == 0.0)) and bool(jnp.all(img[5] == 0.0))
    assert int(msk[2]) == 0 and int(msk[5]) == 0 and int(msk[0]) == 1

    # --- Case 2: bf16, B=8 -> sublane packing to (16, 256); dtype preserved --
    xb = jax.random.normal(k2, (8, 512), dtype=jnp.float32).astype(jnp.bfloat16)
    mb = jnp.array([1, 0, 1, 1, 0, 1, 1, 1], dtype=jnp.bfloat16)
    ref_b = xb * mb[:, None]                 # computed BEFORE xb is donated
    yb = jax.block_until_ready(_process_batch_jit(xb, mb))
    assert yb.dtype == jnp.bfloat16
    assert bool(jnp.array_equal(yb, ref_b))

    # --- Case 3: feature dim 300 (not a multiple of 128): no host pad/slice,
    #             the boundary feature tile is partial and stores are masked --
    xo = jax.random.normal(k3, (4, 3, 10, 10), dtype=jnp.float32)   # F = 300
    items_o = [xo[i] for i in range(4)]
    items_o[1] = None
    ref_o = jnp.stack([x if x is not None else jnp.zeros_like(xo[0])
                       for x in items_o])
    d_o, m_o = model.process_batch({"odd": items_o})
    odd = jax.block_until_ready(d_o["odd"])
    assert odd.shape == (4, 3, 10, 10)
    assert bool(jnp.array_equal(odd, ref_o))
    assert int(m_o["odd"][1]) == 0

    print("KERNEL_OK")
</pallas_src>

<mosaic_0001>
module attributes {stable_mosaic.version = 11 : i64} {
  func.func @_mask_batch_kernel(%arg0: i32, %arg1: i32, %arg2: memref<8x1xf32, #tpu.memory_space<vmem>>, %arg3: memref<8x256xf32, #tpu.memory_space<vmem>>, %arg4: memref<8x256xf32, #tpu.memory_space<vmem>>) attributes {dimension_semantics = [#tpu.dimension_semantics<parallel>, #tpu.dimension_semantics<parallel>], iteration_bounds = array<i64: 1, 4>, scalar_prefetch = 0 : i64, scratch_operands = 0 : i64, tpu.core_type = #tpu.core_type<tc>, window_params = [{transform_indices = @transform_0, window_bounds = array<i64: 8, 1>}, {transform_indices = @transform_1, window_bounds = array<i64: 8, 256>}, {transform_indices = @transform_2, window_bounds = array<i64: 8, 256>}]} {
    %c0 = arith.constant 0 : index
    %c0_0 = arith.constant 0 : index
    %0 = vector.load %arg3[%c0, %c0_0] : memref<8x256xf32, #tpu.memory_space<vmem>>, vector<8x256xf32>
    %c0_1 = arith.constant 0 : index
    %c0_2 = arith.constant 0 : index
    %1 = vector.load %arg2[%c0_1, %c0_2] : memref<8x1xf32, #tpu.memory_space<vmem>>, vector<8x1xf32>
    %2 = vector.broadcast %1 : vector<8x1xf32> to vector<8x256xf32>
    %3 = arith.mulf %0, %2 : vector<8x256xf32>
    %c0_3 = arith.constant 0 : index
    %c0_4 = arith.constant 0 : index
    %4 = vector.load %arg4[%c0_3, %c0_4] : memref<8x256xf32, #tpu.memory_space<vmem>>, vector<8x256xf32>
    tpu.vector_store %arg4[%c0_3, %c0_4], %3 {strides = array<i32>} : memref<8x256xf32, #tpu.memory_space<vmem>>, vector<8x256xf32>,
    return
  }
  func.func @transform_0(%arg0: i32, %arg1: i32) -> (i32, i32) {
    %c0_i32 = arith.constant 0 : i32
    %c0_i32_0 = arith.constant 0 : i32
    return %arg0, %c0_i32 : i32, i32
  }
  func.func @transform_1(%arg0: i32, %arg1: i32) -> (i32, i32) {
    %c0_i32 = arith.constant 0 : i32
    return %arg0, %arg1 : i32, i32
  }
  func.func @transform_2(%arg0: i32, %arg1: i32) -> (i32, i32) {
    %c0_i32 = arith.constant 0 : i32
    return %arg0, %arg1 : i32, i32
  }
}

</mosaic_0001>

<bundles_post_ra>
// kernel: process_batch_pallas.1
= control target key start
LH: loop header
LB: loop body
LE: loop exit
PB: predicated region body
PF: predicated region fallthrough
CT: control target
= control target key end

     0   :  { %7 = vsyncpa [#allocation3], 0  ;;  %s712_s0 = inlined_call_operand.vmem [shape: f32[8,1], index: 0, kind: input, shape index: {}]   ;;  %s713_s1 = inlined_call_operand.hbm [shape: f32[8,1024], index: 1, kind: input, shape index: {}, may-alias: {1,2}]   ;;  %s714_s2 = inlined_call_operand.hbm [shape: f32[8,1024], index: 2, kind: output, shape index: {}, may-alias: {1,2}]  }
   0x1   :  { %9 = vsyncpa [#allocation3 + $0x1], 0 }
   0x2   :  { %10 = vsyncpa [#allocation4], 0 }
   0x3   :  { %12 = vsyncpa [#allocation4 + $0x1], 0  ;;  %s539_s9 = smov 0   ;;  %s541_s10 = smov 0  }
   0x4   :  { %s543_s11 = smov 0   ;;  %s545_s12 = smov 0  }
   0x5   :  { %s547_s13 = smov 0   ;;  %s549_s14 = smov 0  }
   0x6 LB: > { %s325_s15 = sadd.s32 4294967295, %s519_s14   ;;  %s326_s16 = sadd.s32 4294967294, %s519_s14   ;;  %s519_s14 = sphi %s549_s14, %s18_s14   ;;  %s515_s13 = sphi %s547_s13, %s729_s13   ;;  %s511_s12 = sphi %s545_s12, %s728_s12   ;;  %s507_s11 = sphi %s543_s11, %s727_s11   ;;  %s503_s10 = sphi %s541_s10, %s726_s10   ;;  %s499_s9 = sphi %s539_s9, %s725_s9  }
   0x7   : > { %s27_s17 = sadd.s32 1, %s515_s13  ;;  %s65_s18 = sadd.s32 1, %s507_s11 }
   0x8   : > { %p28_p0 = scmp.ge.s32.totalorder %s27_s17, 4  ;;  %p72_p1 = scmp.ne.s32.totalorder %s507_s11, %s503_s10 }
   0x9   : > { %p73_p2 = scmp.eq.s32.totalorder %s519_s14, 0  ;;  %p78_p3 = scmp.ne.s32.totalorder %s503_s10, %s499_s9 }
   0xa   : > { %s731_s17 = smov (%p28_p0, %s27_s17), 0  ;;  %p79_p5 = scmp.eq.s32.totalorder %s325_s15, 0 }
   0xb   : > { %p580_p4 = por %p73_p2, %p72_p1  ;;  %s61_s20 = ssub.s32 %s515_s13, %s731_s17 }
   0xc   : > { %p104_p6 = scmp.eq.s32.totalorder %s325_s15, 3  ;;  %p63_p7 = scmp.eq.s32.totalorder %s61_s20, 0 }
   0xd   : > { %p586_p8 = por %p79_p5, %p78_p3  ;;  %p110_p10 = scmp.eq.s32.totalorder %s326_s16, 3 }
   0xe   : > { %p590_p9 = por %p104_p6, %p72_p1  ;;  %p355_p12 = scmp.lt.s32.totalorder %s519_s14, 4 }
   0xf   : > { %s595_s23 = scalar_select %p63_p7, %s507_s11, %s65_s18  }
  0x10   : > { %s718_s22 = scalar_select %p590_p9, 1, 0 }
  0x11   : > { %p597_p11 = por %p110_p10, %p78_p3  ;;  %s137_s25 = sand.u32 1, %s507_s11  }
  0x12   : > { %s330_s26 = sshll.u32 %s137_s25, 4  ;;  %s341_s27 = sshll.u32 %s515_s13, 8 }
  0x13   : > { %s719_s24 = scalar_select %p597_p11, 1, 0 }
  0x14   : > { %s607_s30 = scalar_lea.hbm %s713_s1, %s341_s27  ;;  %s141_s3 = scalar_lea.vmem [#allocation2], %s330_s26 }
  0x15   : > { %s151_s4 = sshll.u32 %s141_s3, 4  ;;  %p613_p13 = pnand %p355_p12, %p580_p4  ;;  %s609_s4 = int_to_ptr.vmem [resolvable:$true] %s151_s4 }
  0x16   : > { %s138_s6 = scalar_lea.sflag [#allocation3], %s137_s25  ;;  %s407_s7 = scalar_lea.hbm %s607_s30, 256 }
  0x17   : > { %p408_p2 = scmp.ne.s32.totalorder %s607_s30, %s407_s7  ;;  %p409_p3 = pneg %p613_p13 }
  0x18   : > { %s412_s16 = scalar_lea.hbm %s713_s1, 1024  ;;  %p413_p4 = scmp.lt.u32.totalorder %s607_s30, %s713_s1 }
  0x19   : > { %p410_p5 = pnand %p409_p3, %p408_p2  ;;  %p414_p7 = scmp.lt.u32.totalorder %s412_s16, %s407_s7 }
  0x1a   : > { %p416_p12 = scmp.lt.u32.totalorder %s407_s7, %s607_s30 }
  0x1b   : > { %p411_p6 = pneg %p410_p5  ;;  %p415_p10 = por %p414_p7, %p413_p4 }
  0x1d   : > { %p417_p0 = por %p416_p12, %p415_p10 }
  0x1f   : > { %p418_p1 = pnand %p417_p0, %p411_p6 }
  0x21   : > { %421 = shalt.err (!%p418_p1)
}
  0x22   : > { %s422_s20 = scalar_lea.vmem %s609_s4, 256  ;;  %s521_s25 = smov [#allocation2]  }
  0x23   : > { %p423_p2 = scmp.ne.s32.totalorder %s609_s4, %s422_s20  ;;  %s427_s26 = sshll.u32 %s521_s25, 4  ;;  %s428_s26 = int_to_ptr.vmem [resolvable:$false] %s427_s26 }
  0x24   : > { %s429_s27 = scalar_lea.vmem %s428_s26, 512  ;;  %p430_p9 = scmp.lt.s32.totalorder %s609_s4, %s428_s26 }
  0x25   : > { %p425_p5 = pnand %p423_p2, %p409_p3  ;;  %p431_p4 = scmp.lt.s32.totalorder %s429_s27, %s422_s20 }
  0x27   : > { %p426_p11 = pneg %p425_p5  ;;  %p432_p7 = por %p431_p4, %p430_p9 }
  0x29   : > { %p433_p10 = pnand %p432_p7, %p426_p11 }
  0x2b   : > { %436 = shalt.err (!%p433_p10)
}
  0x2c   : > { %350 = dma.hbm_to_vmem [thread:$0]  (!%p613_p13), %s607_s30, 256, %s609_s4, %s138_s6  }
  0x2d   : > { %p721_p0 = scmp.lt.s32.totalorder %s519_s14, 5  ;;  %p722_p1 = scmp.ge.s32.totalorder %s519_s14, 1 }
  0x2f   : > { %p157_p3 = pnand %p722_p1, %p721_p0 }
  0x30   : > { %s649_s28 = sand.u32 (!%p157_p3), 1, %s503_s10  }
  0x31   : > { %160 = sbr.rel (%p157_p3) target bundleno = 203 (0xcb), region = 28  ;;  %s334_s29 = sshll.u32 (!%p157_p3), %s649_s28, 4 }
  0x32   : > { %s163_s3 = scalar_lea.sflag (!%p157_p3), [#allocation3], %s649_s28  ;;  %s166_s7 = scalar_lea.vmem (!%p157_p3), [#allocation2], %s334_s29 }
  0x38   : > { %490 = dma.done.wait (%p586_p8), %s163_s3, 256  }
  0x39   : > { %492 = vsyncadd (%p586_p8), %s163_s3, 4294967040  ;;  %v522_v0 = vmov 0   ;;  %v199_v1 = vld [vmem:[%s712_s0] sm:$0xff]  ;;  %v198_v3 = vld [vmem:[%s166_s7 + $0x8] sm:$0xff]  ;;  %s342_s5 = sshll.u32 %s511_s12, 8  ;;  %s190_s6 = scalar_lea.vmem [#allocation5], %s334_s29 }
  0x3a   : > { %406 = vset.pattern.permute.xlu0 %v522_v0  ;;  %v197_v2 = vld [vmem:[%s166_s7] sm:$0xff]  ;;  %s226_s8 = sshll.u32 %s190_s6, 4  ;;  %s664_s16 = scalar_lea.hbm %s714_s2, %s342_s5  ;;  %s666_s8 = int_to_ptr.vmem [resolvable:$true] %s226_s8 }
  0x3b   : > { %202 = vperm.xlu0 %406, %v199_v1   ;;  %s210_s18 = scalar_lea.sflag [#allocation4], %s649_s28  ;;  %s437_s19 = scalar_lea.vmem %s666_s8, 256 }
  0x3c   : > { %p438_p8 = scmp.ne.s32.totalorder %s666_s8, %s437_s19  ;;  %p723_p9 = scmp.ne.s32.totalorder %s718_s22, 0 }
  0x3d   : > { %s523_s12 = smov [#allocation5]  }
  0x3e   : > { %p439_p11 = pnand %p438_p8, %p723_p9  ;;  %s441_s20 = sshll.u32 %s523_s12, 4  ;;  %s442_s20 = int_to_ptr.vmem [resolvable:$false] %s441_s20 }
  0x3f   : > { %s443_s25 = scalar_lea.vmem %s442_s20, 512  ;;  %p444_p6 = scmp.lt.s32.totalorder %s666_s8, %s442_s20 }
  0x40   : > { %p440_p13 = pneg %p439_p11  ;;  %p445_p12 = scmp.lt.s32.totalorder %s443_s25, %s437_s19 }
  0x42   : > { %p446_p2 = por %p445_p12, %p444_p6 }
  0x44   : > { %p447_p5 = pnand %p446_p2, %p440_p13 }
  0xba   : > { %v203_v4 = vpop.permute.xlu0 %202 }
  0xbb   : > { %v205_v5 = vmul.f32 %v203_v4, %v197_v2  ;;  %v206_v6 = vmul.f32 %v203_v4, %v198_v3 }
  0xbd   : > { %207 = vst [vmem:[%s190_s6] sm:$0xff] %v205_v5  ;;  %208 = vst [vmem:[%s190_s6 + $0x8] sm:$0xff] %v206_v6 }
  0xbe   : > { %450 = shalt.err (!%p447_p5)
}
  0xbf   : > { %s451_s26 = scalar_lea.hbm %s664_s16, 256  ;;  %s455_s29 = scalar_lea.hbm %s714_s2, 1024 }
  0xc0   : > { %p452_p4 = scmp.ne.s32.totalorder %s664_s16, %s451_s26  ;;  %p456_p0 = scmp.lt.u32.totalorder %s664_s16, %s714_s2 }
  0xc1   : > { %p457_p1 = scmp.lt.u32.totalorder %s455_s29, %s451_s26  ;;  %p459_p8 = scmp.lt.u32.totalorder %s451_s26, %s664_s16 }
  0xc2   : > { %p453_p7 = pnand %p452_p4, %p723_p9 }
  0xc3   : > { %p458_p3 = por %p457_p1, %p456_p0 }
  0xc4   : > { %p454_p10 = pneg %p453_p7 }
  0xc5   : > { %p460_p11 = por %p459_p8, %p458_p3 }
  0xc7   : > { %p461_p13 = pnand %p460_p11, %p454_p10 }
  0xc9   : > { %464 = shalt.err (!%p461_p13)
}
  0xca   : > { %345 = dma.vmem_to_hbm [thread:$0]  (%p723_p9), %s666_s8, 256, %s664_s16, %s210_s18  }
  0xcb PF: > { %p356_p6 = scmp.ge.s32.totalorder %s519_s14, 2  ;;  %s238_s30 = sand.u32 1, %s499_s9  }
  0xcc   : > { %p724_p12 = scmp.ne.s32.totalorder %s719_s24, 0  ;;  %s239_s4 = scalar_lea.sflag [#allocation4], %s238_s30 }
  0xce   : > { %p352_p2 = pnand %p356_p6, %p724_p12 }
  0xd0   : > { %494 = dma.done.wait (!%p352_p2), %s239_s4, 256  }
  0xd1   : > { %496 = vsyncadd (!%p352_p2), %s239_s4, 4294967040  ;;  %s18_s14 = sadd.s32 1, %s519_s14   ;;  %s725_s9 = smov %s503_s10 }
  0xd2   : > { %p15_p5 = scmp.ge.s32.totalorder %s18_s14, 6   ;;  %s726_s10 = smov %s507_s11 }
  0xd3   : > { %s727_s11 = smov %s595_s23  ;;  %s728_s12 = smov %s515_s13 }
  0xd4   : > { %s729_s13 = smov %s731_s17  ;;  %17 = sbr.rel (!%p15_p5) target bundleno = 6 (0x6), region = 76 }
  0xdb   :  { %244 = vsyncpa [#allocation3], 1 }
  0xdc   :  { %246 = vsyncpa [#allocation3 + $0x1], 1 }
  0xdd   :  { %247 = vsyncpa [#allocation4], 1 }
  0xde   :  { %249 = vsyncpa [#allocation4 + $0x1], 1 }

</bundles_post_ra>
